<compile_context>
chip_gen: v6e
topology: v6e:2x2x1
jax: 0.10.0
libtpu: 0.0.40
codegen_flags: <defaults>
</compile_context>

<pallas_src>
import math

import jax
import jax.numpy as jnp
from jax.experimental import pallas as pl
from jax.experimental.pallas import tpu as pltpu


def critic_kernel(s_ref, a_ref, w1s_ref, w1a_ref, b1_ref, w2_ref, b2_ref,
                  w3_ref, b3_ref, o_ref):
    """One batch tile of the 3-layer MLP. Weights stay resident across tiles."""
    # Layer 1: fused concat via split weights (MXU), f32 accumulation.
    h1 = jnp.dot(s_ref[...], w1s_ref[...], preferred_element_type=jnp.float32)
    h1 = h1 + jnp.dot(a_ref[...], w1a_ref[...], preferred_element_type=jnp.float32)
    h1 = jnp.maximum(h1 + b1_ref[...], 0.0).astype(w2_ref.dtype)

    # Layer 2.
    h2 = jnp.dot(h1, w2_ref[...], preferred_element_type=jnp.float32) + b2_ref[...]
    h2 = jnp.maximum(h2, 0.0).astype(w3_ref.dtype)

    # Layer 3 (H -> 1): plain (tb,H) @ (H,1) matmul — no activation transpose.
    q = jnp.dot(h2, w3_ref[...], preferred_element_type=jnp.float32)
    o_ref[...] = (q + b3_ref[0]).astype(o_ref.dtype)


def _round_up(x, m):
    return ((x + m - 1) // m) * m


def _maybe_cast(x, dt):
    return x if x.dtype == dt else x.astype(dt)


def critic_forward(state, action, params, *, tile_b=2048,
                   compute_dtype=jnp.bfloat16):
    """Tiled Pallas forward. Returns (B, 1) f32 Q-values."""
    w1, b1, w2, b2, w3, b3 = params
    B, state_dim = state.shape
    action_dim = action.shape[1]
    H = w1.shape[1]

    # bf16 packs 16 rows per sublane group; f32 packs 8.
    sublane = 16 if compute_dtype == jnp.bfloat16 else 8
    tile_b = max(int(tile_b), sublane)

    if B <= tile_b:
        # Single tile: block batch dim == full array dim (always legal),
        # no padding needed for any B.
        tb = B
        num_tiles = 1
    else:
        # Even number of tiles so the "parallel" grid axis shards evenly
        # across v7x's 2 TensorCores (no-op on v5e/v6e).
        nt = _round_up(pl.cdiv(B, tile_b), 2)
        tb = _round_up(pl.cdiv(B, nt), sublane)
        num_tiles = pl.cdiv(B, tb)      # trailing block may be ragged

    # Split fused first-layer weight -> no concat of (state, action) in HBM.
    w1_s = _maybe_cast(w1[:state_dim], compute_dtype)
    w1_a = _maybe_cast(w1[state_dim:], compute_dtype)
    w2c = _maybe_cast(w2, compute_dtype)
    w3c = _maybe_cast(w3.T, compute_dtype)          # (H, 1) column
    b3_smem = b3.reshape((1,)).astype(jnp.float32)  # SMEM scalar

    state_c = _maybe_cast(state, compute_dtype)
    action_c = _maybe_cast(action, compute_dtype)

    itemsize = jnp.dtype(compute_dtype).itemsize
    cost = pl.CostEstimate(
        flops=2 * B * ((state_dim + action_dim) * H + H * H + H),
        transcendentals=0,
        bytes_accessed=(B * (state_dim + action_dim) * itemsize
                        + ((state_dim + action_dim) * H + H * H + H) * itemsize
                        + (2 * H + 1) * 4
                        + B * 4),
    )

    out = pl.pallas_call(
        critic_kernel,
        out_shape=jax.ShapeDtypeStruct((B, 1), jnp.float32),
        grid=(num_tiles,),
        in_specs=[
            pl.BlockSpec((tb, state_dim), lambda i: (i, 0)),
            pl.BlockSpec((tb, action_dim), lambda i: (i, 0)),
            pl.BlockSpec((state_dim, H), lambda i: (0, 0)),   # resident weights
            pl.BlockSpec((action_dim, H), lambda i: (0, 0)),
            pl.BlockSpec((1, H), lambda i: (0, 0)),
            pl.BlockSpec((H, H), lambda i: (0, 0)),
            pl.BlockSpec((1, H), lambda i: (0, 0)),
            pl.BlockSpec((H, 1), lambda i: (0, 0)),
            pl.BlockSpec(memory_space=pltpu.MemorySpace.SMEM),  # b3 scalar
        ],
        out_specs=pl.BlockSpec((tb, 1), lambda i: (i, 0)),
        compiler_params=pltpu.CompilerParams(
            dimension_semantics=("parallel",)),
        cost_estimate=cost,
    )(state_c, action_c, w1_s, w1_a, b1, w2c, b2, w3c, b3_smem)

    return out


def init_critic_params(key, state_dim, action_dim, hidden_dim=64, init_w=0.003):
    """Init matching the PyTorch module's scheme.

    linear1/linear2: default nn.Linear init  U(-1/sqrt(fan_in), 1/sqrt(fan_in))
    linear3:         U(-init_w, init_w)
    Weights stored transposed to (in, out); W3 stored as a (1, H) row.
    """
    in_dim = state_dim + action_dim
    k = jax.random.split(key, 6)

    def uniform(kk, shape, bound):
        return jax.random.uniform(kk, shape, jnp.float32, -bound, bound)

    bnd1 = 1.0 / math.sqrt(in_dim)
    bnd2 = 1.0 / math.sqrt(hidden_dim)
    w1 = uniform(k[0], (in_dim, hidden_dim), bnd1)
    b1 = uniform(k[1], (1, hidden_dim), bnd1)
    w2 = uniform(k[2], (hidden_dim, hidden_dim), bnd2)
    b2 = uniform(k[3], (1, hidden_dim), bnd2)
    w3 = uniform(k[4], (1, hidden_dim), init_w)
    b3 = uniform(k[5], (1, 1), init_w)
    return (w1, b1, w2, b2, w3, b3)


def critic_ref(state, action, params):
    """Pure-JAX reference for correctness checking."""
    w1, b1, w2, b2, w3, b3 = params
    x = jnp.concatenate([state, action], axis=1)
    h1 = jnp.maximum(x @ w1 + b1, 0.0)
    h2 = jnp.maximum(h1 @ w2 + b2, 0.0)
    return h2 @ w3.T + b3


if __name__ == "__main__":
    batch, state_dim, action_dim, hidden_dim = 2, 8, 4, 32

    root = jax.random.PRNGKey(0)
    k_params, k_state, k_action = jax.random.split(root, 3)

    params = init_critic_params(k_params, state_dim, action_dim, hidden_dim)
    state = jax.random.normal(k_state, (batch, state_dim), jnp.float32)
    action = jax.random.normal(k_action, (batch, action_dim), jnp.float32)
    q_ref = critic_ref(state, action, params)

    # f32 path — exact match to the reference (single full-batch tile).
    q32 = critic_forward(state, action, params, compute_dtype=jnp.float32)
    jax.block_until_ready(q32)
    assert q32.shape == (batch, 1)
    assert jnp.allclose(q32, q_ref, atol=1e-5, rtol=1e-5)

    # Default bf16-stream path (f32 accumulation) — looser tolerance.
    q_bf16 = critic_forward(state, action, params)
    jax.block_until_ready(q_bf16)
    assert jnp.allclose(q_bf16, q_ref, atol=2e-2, rtol=2e-2)

    # Multi-tile path exercising the grid + ragged trailing block (no padding).
    B2 = 300
    k_s2, k_a2 = jax.random.split(jax.random.PRNGKey(1), 2)
    state2 = jax.random.normal(k_s2, (B2, state_dim), jnp.float32)
    action2 = jax.random.normal(k_a2, (B2, action_dim), jnp.float32)
    q2 = critic_forward(state2, action2, params, tile_b=128,
                        compute_dtype=jnp.float32)
    jax.block_until_ready(q2)
    q2_ref = critic_ref(state2, action2, params)
    assert q2.shape == (B2, 1)
    assert jnp.allclose(q2, q2_ref, atol=1e-5, rtol=1e-5)

    print("KERNEL_OK")
</pallas_src>

<mosaic_0001>
module attributes {stable_mosaic.version = 11 : i64} {
  func.func @critic_kernel(%arg0: i32, %arg1: memref<2x8xf32, #tpu.memory_space<vmem>>, %arg2: memref<2x4xf32, #tpu.memory_space<vmem>>, %arg3: memref<8x32xf32, #tpu.memory_space<vmem>>, %arg4: memref<4x32xf32, #tpu.memory_space<vmem>>, %arg5: memref<1x32xf32, #tpu.memory_space<vmem>>, %arg6: memref<32x32xf32, #tpu.memory_space<vmem>>, %arg7: memref<1x32xf32, #tpu.memory_space<vmem>>, %arg8: memref<32x1xf32, #tpu.memory_space<vmem>>, %arg9: memref<1xf32, #tpu.memory_space<smem>>, %arg10: memref<2x1xf32, #tpu.memory_space<vmem>>) attributes {dimension_semantics = [#tpu.dimension_semantics<parallel>], iteration_bounds = array<i64: 1>, scalar_prefetch = 0 : i64, scratch_operands = 0 : i64, tpu.core_type = #tpu.core_type<tc>, window_params = [{transform_indices = @transform_0, window_bounds = array<i64: 2, 8>}, {transform_indices = @transform_1, window_bounds = array<i64: 2, 4>}, {pipeline_mode = #tpu.pipeline_mode<synchronous>, transform_indices = @transform_2, window_bounds = array<i64: 8, 32>}, {pipeline_mode = #tpu.pipeline_mode<synchronous>, transform_indices = @transform_3, window_bounds = array<i64: 4, 32>}, {pipeline_mode = #tpu.pipeline_mode<synchronous>, transform_indices = @transform_4, window_bounds = array<i64: 1, 32>}, {pipeline_mode = #tpu.pipeline_mode<synchronous>, transform_indices = @transform_5, window_bounds = array<i64: 32, 32>}, {pipeline_mode = #tpu.pipeline_mode<synchronous>, transform_indices = @transform_6, window_bounds = array<i64: 1, 32>}, {pipeline_mode = #tpu.pipeline_mode<synchronous>, transform_indices = @transform_7, window_bounds = array<i64: 32, 1>}, {transform_indices = @transform_8, window_bounds = array<i64: 1>}, {transform_indices = @transform_9, window_bounds = array<i64: 2, 1>}]} {
    %c0 = arith.constant 0 : index
    %c0_0 = arith.constant 0 : index
    %0 = vector.load %arg1[%c0, %c0_0] : memref<2x8xf32, #tpu.memory_space<vmem>>, vector<2x8xf32>
    %c0_1 = arith.constant 0 : index
    %c0_2 = arith.constant 0 : index
    %1 = vector.load %arg3[%c0_1, %c0_2] : memref<8x32xf32, #tpu.memory_space<vmem>>, vector<8x32xf32>
    %cst = arith.constant dense<0.000000e+00> : vector<2x32xf32>
    %2 = tpu.matmul %0, %1, %cst {dimension_numbers = #tpu.dot_dimension_numbers<[1], [0], [0], [1], [0, 0, 1, 1], [], []>} : vector<2x8xf32>, vector<8x32xf32>, vector<2x32xf32> -> vector<2x32xf32>
    %c0_3 = arith.constant 0 : index
    %c0_4 = arith.constant 0 : index
    %3 = vector.load %arg2[%c0_3, %c0_4] : memref<2x4xf32, #tpu.memory_space<vmem>>, vector<2x4xf32>
    %c0_5 = arith.constant 0 : index
    %c0_6 = arith.constant 0 : index
    %4 = vector.load %arg4[%c0_5, %c0_6] : memref<4x32xf32, #tpu.memory_space<vmem>>, vector<4x32xf32>
    %cst_7 = arith.constant dense<0.000000e+00> : vector<2x32xf32>
    %5 = tpu.matmul %3, %4, %cst_7 {dimension_numbers = #tpu.dot_dimension_numbers<[1], [0], [0], [1], [0, 0, 1, 1], [], []>} : vector<2x4xf32>, vector<4x32xf32>, vector<2x32xf32> -> vector<2x32xf32>
    %6 = arith.addf %2, %5 : vector<2x32xf32>
    %c0_8 = arith.constant 0 : index
    %c0_9 = arith.constant 0 : index
    %7 = vector.load %arg5[%c0_8, %c0_9] : memref<1x32xf32, #tpu.memory_space<vmem>>, vector<1x32xf32>
    %8 = vector.broadcast %7 : vector<1x32xf32> to vector<2x32xf32>
    %9 = arith.addf %6, %8 : vector<2x32xf32>
    %cst_10 = arith.constant 0.000000e+00 : f32
    %10 = vector.broadcast %cst_10 : f32 to vector<2x32xf32>
    %11 = arith.maximumf %9, %10 : vector<2x32xf32>
    %c0_11 = arith.constant 0 : index
    %c0_12 = arith.constant 0 : index
    %12 = vector.load %arg6[%c0_11, %c0_12] : memref<32x32xf32, #tpu.memory_space<vmem>>, vector<32x32xf32>
    %cst_13 = arith.constant dense<0.000000e+00> : vector<2x32xf32>
    %13 = tpu.matmul %11, %12, %cst_13 {dimension_numbers = #tpu.dot_dimension_numbers<[1], [0], [0], [1], [0, 0, 1, 1], [], []>} : vector<2x32xf32>, vector<32x32xf32>, vector<2x32xf32> -> vector<2x32xf32>
    %c0_14 = arith.constant 0 : index
    %c0_15 = arith.constant 0 : index
    %14 = vector.load %arg7[%c0_14, %c0_15] : memref<1x32xf32, #tpu.memory_space<vmem>>, vector<1x32xf32>
    %15 = vector.broadcast %14 : vector<1x32xf32> to vector<2x32xf32>
    %16 = arith.addf %13, %15 : vector<2x32xf32>
    %cst_16 = arith.constant 0.000000e+00 : f32
    %17 = vector.broadcast %cst_16 : f32 to vector<2x32xf32>
    %18 = arith.maximumf %16, %17 : vector<2x32xf32>
    %c0_17 = arith.constant 0 : index
    %c0_18 = arith.constant 0 : index
    %19 = vector.load %arg8[%c0_17, %c0_18] : memref<32x1xf32, #tpu.memory_space<vmem>>, vector<32x1xf32>
    %cst_19 = arith.constant dense<0.000000e+00> : vector<2x1xf32>
    %20 = tpu.matmul %18, %19, %cst_19 {dimension_numbers = #tpu.dot_dimension_numbers<[1], [0], [0], [1], [0, 0, 1, 1], [], []>} : vector<2x32xf32>, vector<32x1xf32>, vector<2x1xf32> -> vector<2x1xf32>
    %c0_20 = arith.constant 0 : index
    %21 = memref.load %arg9[%c0_20] : memref<1xf32, #tpu.memory_space<smem>>
    %22 = vector.broadcast %21 : f32 to vector<2x1xf32>
    %23 = arith.addf %20, %22 : vector<2x1xf32>
    %c0_21 = arith.constant 0 : index
    %c0_22 = arith.constant 0 : index
    %24 = vector.load %arg10[%c0_21, %c0_22] : memref<2x1xf32, #tpu.memory_space<vmem>>, vector<2x1xf32>
    tpu.vector_store %arg10[%c0_21, %c0_22], %23 {strides = array<i32>} : memref<2x1xf32, #tpu.memory_space<vmem>>, vector<2x1xf32>,
    return
  }
  func.func @transform_0(%arg0: i32) -> (i32, i32) {
    %c0_i32 = arith.constant 0 : i32
    %c0_i32_0 = arith.constant 0 : i32
    return %arg0, %c0_i32 : i32, i32
  }
  func.func @transform_1(%arg0: i32) -> (i32, i32) {
    %c0_i32 = arith.constant 0 : i32
    %c0_i32_0 = arith.constant 0 : i32
    return %arg0, %c0_i32 : i32, i32
  }
  func.func @transform_2(%arg0: i32) -> (i32, i32) {
    %c0_i32 = arith.constant 0 : i32
    %c0_i32_0 = arith.constant 0 : i32
    %c0_i32_1 = arith.constant 0 : i32
    return %c0_i32, %c0_i32_0 : i32, i32
  }
  func.func @transform_3(%arg0: i32) -> (i32, i32) {
    %c0_i32 = arith.constant 0 : i32
    %c0_i32_0 = arith.constant 0 : i32
    %c0_i32_1 = arith.constant 0 : i32
    return %c0_i32, %c0_i32_0 : i32, i32
  }
  func.func @transform_4(%arg0: i32) -> (i32, i32) {
    %c0_i32 = arith.constant 0 : i32
    %c0_i32_0 = arith.constant 0 : i32
    %c0_i32_1 = arith.constant 0 : i32
    return %c0_i32, %c0_i32_0 : i32, i32
  }
  func.func @transform_5(%arg0: i32) -> (i32, i32) {
    %c0_i32 = arith.constant 0 : i32
    %c0_i32_0 = arith.constant 0 : i32
    %c0_i32_1 = arith.constant 0 : i32
    return %c0_i32, %c0_i32_0 : i32, i32
  }
  func.func @transform_6(%arg0: i32) -> (i32, i32) {
    %c0_i32 = arith.constant 0 : i32
    %c0_i32_0 = arith.constant 0 : i32
    %c0_i32_1 = arith.constant 0 : i32
    return %c0_i32, %c0_i32_0 : i32, i32
  }
  func.func @transform_7(%arg0: i32) -> (i32, i32) {
    %c0_i32 = arith.constant 0 : i32
    %c0_i32_0 = arith.constant 0 : i32
    %c0_i32_1 = arith.constant 0 : i32
    return %c0_i32, %c0_i32_0 : i32, i32
  }
  func.func @transform_8(%arg0: i32) -> i32 {
    %c0_i32 = arith.constant 0 : i32
    %c0_i32_0 = arith.constant 0 : i32
    return %c0_i32 : i32
  }
  func.func @transform_9(%arg0: i32) -> (i32, i32) {
    %c0_i32 = arith.constant 0 : i32
    %c0_i32_0 = arith.constant 0 : i32
    return %arg0, %c0_i32 : i32, i32
  }
}

</mosaic_0001>

<bundles_post_ra>
// kernel: tpu_custom_call.1
= control target key start
LH: loop header
LB: loop body
LE: loop exit
PB: predicated region body
PF: predicated region fallthrough
CT: control target
= control target key end

     0   :  { %15 = vsyncpa [#allocation4], 0  ;;  %s637_s0 = inlined_call_operand.hbm [shape: f32[2,8], index: 0, kind: input, shape index: {}]   ;;  %s638_s1 = inlined_call_operand.hbm [shape: f32[2,4], index: 1, kind: input, shape index: {}]   ;;  %s639_s2 = inlined_call_operand.vmem [shape: f32[8,32], index: 2, kind: input, shape index: {}]   ;;  %s640_s3 = inlined_call_operand.vmem [shape: f32[4,32], index: 3, kind: input, shape index: {}]   ;;  %s641_s4 = inlined_call_operand.hbm [shape: f32[1,32], index: 4, kind: input, shape index: {}]   ;;  %s642_s5 = inlined_call_operand.vmem [shape: f32[32,32], index: 5, kind: input, shape index: {}]   ;;  %s643_s6 = inlined_call_operand.vmem [shape: f32[1,32], index: 6, kind: input, shape index: {}]   ;;  %s644_s7 = inlined_call_operand.vmem [shape: f32[32,1], index: 7, kind: input, shape index: {}]   ;;  %s645_s8 = inlined_call_operand.<no memory space> [shape: f32[1], index: 8, kind: input, shape index: {}]   ;;  %s646_s9 = inlined_call_operand.vmem [shape: f32[2,1], index: 9, kind: output, shape index: {}]  }
   0x1   :  { %16 = vsyncpa [#allocation6], 0  ;;  %s528_s30 = smov [#allocation5]   ;;  %s529_s11 = smov [#allocation3]  }
   0x2   :  { %s33_s10 = sshll.u32 %s528_s30, 4  ;;  %s23_s12 = sshll.u32 %s529_s11, 4  ;;  %s34_s10 = int_to_ptr.vmem [resolvable:$true] %s33_s10  ;;  %s24_s12 = int_to_ptr.vmem [resolvable:$true] %s23_s12 }
   0x3   :  { %s472_s13 = scalar_lea.vmem %s34_s10, 32  ;;  %p477_p1 = scmp.lt.s32.totalorder %s34_s10, %s34_s10 }
   0x4   :  { %p473_p0 = scmp.ne.s32.totalorder %s34_s10, %s472_s13  ;;  %p478_p2 = scmp.lt.s32.totalorder %s472_s13, %s472_s13 }
   0x6   :  { %p479_p3 = por %p478_p2, %p477_p1 }
   0x8   :  { %p480_p4 = pnand %p479_p3, %p473_p0 }
   0xa   :  { %483 = shalt.err (!%p480_p4)
}
   0xb   :  { %36 = dma.hbm_to_vmem [thread:$0]  %s638_s1, 32, %s34_s10, [#allocation6]  }
   0xc   :  { %s492_s16 = scalar_lea.vmem %s24_s12, 32  ;;  %p497_p6 = scmp.lt.s32.totalorder %s24_s12, %s24_s12 }
   0xd   :  { %p493_p5 = scmp.ne.s32.totalorder %s24_s12, %s492_s16  ;;  %p498_p7 = scmp.lt.s32.totalorder %s492_s16, %s492_s16 }
   0xf   :  { %p499_p8 = por %p498_p7, %p497_p6 }
  0x11   :  { %p500_p9 = pnand %p499_p8, %p493_p5 }
  0x13   :  { %503 = shalt.err (!%p500_p9)
}
  0x14   :  { %26 = dma.hbm_to_vmem [thread:$0]  %s637_s0, 32, %s24_s12, [#allocation4]  }
  0x15   :  { %s530_s19 = smov [#allocation7]  }
  0x16   :  { %s47_s20 = sshll.u32 %s530_s19, 4  ;;  %s48_s20 = int_to_ptr.vmem [resolvable:$true] %s47_s20 }
  0x17   :  { %s512_s21 = scalar_lea.vmem %s48_s20, 16  ;;  %s516_s22 = scalar_lea.vmem %s48_s20, 32 }
  0x18   :  { %p513_p10 = scmp.ne.s32.totalorder %s48_s20, %s512_s21  ;;  %p517_p11 = scmp.lt.s32.totalorder %s48_s20, %s48_s20 }
  0x19   :  { %p518_p12 = scmp.lt.s32.totalorder %s516_s22, %s512_s21 }
  0x1b   :  { %p519_p13 = por %p518_p12, %p517_p11 }
  0x1d   :  { %p520_p0 = pnand %p519_p13, %p513_p10 }
  0x1f   :  { %523 = shalt.err (!%p520_p0)
}
  0x20   :  { %50 = dma.hbm_to_vmem [thread:$0]  %s641_s4, 16, %s48_s20, [#allocation6]  }
  0x21   :  { %524 = dma.done.wait [#allocation4], 32  }
  0x22   :  { %525 = vsyncadd [#allocation4], 4294967264 }
  0x23   :  { %526 = dma.done.wait [#allocation6], 48  }
  0x24   :  { %527 = vsyncadd [#allocation6], 4294967248  ;;  %v531_v0 = vmov 0.0   ;;  %vm532_vm0 = vmmov 0   ;;  %vm76_vm1 = vcmask 1043456   ;;  %vm72_vm2 = vcmask 31744  }
  0x25   :  { %427 = vmatprep.subr.mxu0 %v531_v0  ;;  %432 = vmatprep.subr.mxu1 %v531_v0  ;;  %vm150_vm3 = vcmask 64512   ;;  %v71_v1 = vld [vmem:[%s640_s3] sm:$0xf]  ;;  %v236_v5 = vld [vmem:[%s642_s5 + $0x18] sm:$0xff]  ;;  %v235_v6 = vld [vmem:[%s642_s5 + $0x10] sm:$0xff]  ;;  %vm244_vm4 = vcmask 261120   ;;  %v324_v26 = vstv %s645_s8 }
  0x26   :  { %429 = vmatprep.mubr.msk.f32.mxu0 %vm532_vm0, %v531_v0  ;;  %434 = vmatprep.mubr.msk.f32.mxu1 %vm532_vm0, %v531_v0  ;;  %v69_v2 = vld [vmem:[%s639_s2] sm:$0xff]  ;;  %v234_v7 = vld [vmem:[%s642_s5 + $0x8] sm:$0xff]  ;;  %v322_v9 = vld [vmem:[%s644_s7 + $0x18] sm:$0xff]  ;;  %vm398_vm5 = vcmask 1024  }
  0x27   :  { %v70_v3 = vld [vmem:[#allocation5] sm:$0x3]  ;;  %428 = vmatpush3.msk.msra.mxu0 %vm76_vm1, %v71_v1  ;;  %433 = vmatpush3.msra.mxu1 %v69_v2  ;;  %v68_v4 = vld [vmem:[#allocation3] sm:$0x3]  ;;  %v409_v12 = vld [vmem:[#allocation7] ss:$0 sm:$0xff] }
  0x28   :  { %430 = vmatmul.mubr.msk.f32.vlgmr.msra.gmra.mxu0 %vm72_vm2, %v70_v3  ;;  %435 = vmatmul.mubr.msk.f32.vlgmr.msra.gmra.mxu1 %vm150_vm3, %v68_v4  ;;  %v233_v8 = vld [vmem:[%s642_s5] sm:$0xff]  ;;  %v321_v18 = vld [vmem:[%s644_s7 + $0x10] sm:$0xff]  ;;  %v320_v19 = vld [vmem:[%s644_s7 + $0x8] sm:$0xff] }
  0x29   :  { %437 = vmatprep.subr.mxu0 %v531_v0  ;;  %445 = vmatprep.mubr.msk.f32.mxu0 %vm532_vm0, %v531_v0  ;;  %v319_v20 = vld [vmem:[%s644_s7] sm:$0xff] }
  0x2a   :  { %448 = vmatprep.subr.mxu1 %v531_v0  ;;  %456 = vmatprep.mubr.msk.f32.mxu1 %vm532_vm0, %v531_v0  ;;  %v410_v21 = vld [vmem:[%s643_s6] ss:$0 sm:$0xff] }
  0x2b   :  { %438 = vmatpush3.msra.mxu0 %v236_v5  ;;  %449 = vmatpush3.msra.mxu1 %v322_v9 }
  0x2c   :  { %439 = vmatprep.subr.mxu0 %v531_v0  ;;  %450 = vmatprep.subr.mxu1 %v531_v0 }
  0x2d   :  { %440 = vmatpush3.msra.mxu0 %v235_v6  ;;  %451 = vmatpush3.msra.mxu1 %v321_v18 }
  0x2e   :  { %441 = vmatprep.subr.mxu0 %v531_v0  ;;  %452 = vmatprep.subr.mxu1 %v531_v0 }
  0x2f   :  { %442 = vmatpush3.msra.mxu0 %v234_v7  ;;  %453 = vmatpush3.msra.mxu1 %v320_v19 }
  0x30   :  { %443 = vmatprep.subr.mxu0 %v531_v0  ;;  %454 = vmatprep.subr.mxu1 %v531_v0 }
  0x31   :  { %444 = vmatpush3.msra.mxu0 %v233_v8  ;;  %455 = vmatpush3.msra.mxu1 %v319_v20 }
  0xe8   :  { %v146_v10 = vpop.f32.mrf.mxu0  ;;  %v220_v11 = vpop.f32.mrf.mxu1 }
  0xe9   :  { %v221_v13 = vadd.f32 %v220_v11, %v146_v10 }
  0xea   :  { %v431_v14 = vpop.f32.mrf.mxu0  ;;  %v436_v15 = vpop.f32.mrf.mxu1 }
  0xeb   :  { %v231_v16 = vadd.f32 %v409_v12, %v221_v13 }
  0xed   :  { %v232_v17 = vmax.f32 %v231_v16, 0.0 }
  0xef   :  { %446 = vmatmul.mubr.msk.f32.vlgmr.msra.gmra.mxu0 %vm244_vm4, %v232_v17 }
 0x1af   :  { %v314_v22 = vpop.f32.mrf.mxu0 }
 0x1b0   :  { %v315_v23 = vadd.f32 %v410_v21, %v314_v22 }
 0x1b1   :  { %v447_v24 = vpop.f32.mrf.mxu0 }
 0x1b2   :  { %v318_v25 = vmax.f32 %v315_v23, 0.0 }
 0x1b4   :  { %457 = vmatmul.mubr.msk.f32.vlgmr.msra.gmra.mxu1 %vm244_vm4, %v318_v25 }
 0x274   :  { %v394_v27 = vpop.f32.mrf.mxu1 }
 0x275   :  { %v395_v28 = vadd.f32 %v394_v27, %v324_v26 }
 0x276   :  { %v458_v29 = vpop.f32.mrf.mxu1 }
 0x277   :  { %399 = vst.msk [vmem:[%s646_s9] sm:$0x3] %vm398_vm5, %v395_v28 }
 0x278   :  { %404 = vsyncpa [#allocation4], 1 }
 0x279   :  { %405 = vsyncpa [#allocation6], 1 }

</bundles_post_ra>
